<compile_context>
chip_gen: v5e
topology: v5e:2x2
jax: 0.10.0
libtpu: 0.0.40
codegen_flags: <defaults>
</compile_context>

<pallas_src>
import jax
import jax.numpy as jnp
from jax.experimental import pallas as pl
from jax.experimental.pallas import tpu as pltpu


def _round_up(x, m):
    return ((x + m - 1) // m) * m


def _vmem_limit(need_bytes):
    # >= actual footprint + headroom, floor at v5e's 16 MiB default scoped
    # limit, capped well under v7x's 64 MiB physical VMEM.
    return int(min(max(need_bytes + (2 << 20), 16 << 20), 48 << 20))


def _resident_table_kernel(idx_ref, w_ref, b_ref, out_ref):
    """One batch tile: out = one_hot(idx, C) @ table + bias.

    idx_ref: (TB, 1) int32  -- class indices for this batch tile.
    w_ref:   (C, E)         -- full embedding table, resident in VMEM.
    b_ref:   (1, E)         -- bias, resident in VMEM.
    out_ref: (TB, E)        -- output tile (full-sublane, lane-dense store).
    """
    idx = idx_ref[...]                                          # (TB, 1)
    tb = idx.shape[0]
    c = w_ref.shape[0]
    classes = jax.lax.broadcasted_iota(jnp.int32, (tb, c), 1)   # (TB, C)
    one_hot = (classes == idx).astype(w_ref.dtype)              # (TB, C)
    acc = jnp.dot(one_hot, w_ref[...], preferred_element_type=jnp.float32)
    acc = acc + b_ref[...].astype(jnp.float32)
    out_ref[...] = acc.astype(out_ref.dtype)


def _gather_rows_kernel(idx_smem_ref, w_row_ref, b_ref, out_ref):
    """One gathered weight row -> row r of the resident (TB, E) output tile.

    idx_smem_ref: (B_pad,) int32 scalar prefetch (consumed by index_maps).
    w_row_ref:    (1, 1, E) -- gathered weight row for (batch block i, row r).
    b_ref:        (1, E)    -- bias, resident.
    out_ref:      (TB, E)   -- output tile, resident across the row axis.
    """
    del idx_smem_ref
    r = pl.program_id(1)
    row = w_row_ref[0].astype(jnp.float32) + b_ref[...].astype(jnp.float32)
    out_ref[pl.ds(r, 1), :] = row.astype(out_ref.dtype)


def class_embedding(class_idx, w_t, bias, dtype=None, *,
                    block_b=None, table_vmem_budget=8 * 1024 * 1024):
    """Embedding lookup: one_hot(class_idx, C) @ w_t + bias.

    class_idx: [B] integer array.
    w_t:       [C, E] weight (= PyTorch linear.weight.T).
    bias:      [E]    bias   (= PyTorch linear.bias).
    dtype:     output dtype (defaults to w_t.dtype).
    """
    B = int(class_idx.shape[0])
    C, E = int(w_t.shape[0]), int(w_t.shape[1])
    out_dtype = w_t.dtype if dtype is None else jnp.dtype(dtype)

    # Lane-dense embedding axis: pad E to a multiple of 128 (sliced off after).
    E_pad = max(_round_up(E, 128), 128)
    if E_pad != E:
        w_t = jnp.pad(w_t, ((0, 0), (0, E_pad - E)))
        bias = jnp.pad(bias, (0, E_pad - E))

    # Batch tile: multiple of 16 (full sublanes for f32/bf16 outputs); aim for
    # >= 2 grid blocks when B allows so both v7x TensorCores take work.
    if block_b is None:
        tb = 16 if B <= 16 else min(128, _round_up(pl.cdiv(B, 2), 16))
    else:
        tb = max(16, _round_up(int(block_b), 16))
    B_pad = _round_up(B, tb)
    n_blocks = B_pad // tb

    # Clamp indices so the row lookup is always in bounds.
    # (PyTorch's one_hot raises on out-of-range; here OOB indices silently
    #  read the nearest valid row -- documented semantic divergence.)
    idx = jnp.clip(class_idx.astype(jnp.int32), 0, C - 1)
    if B_pad != B:
        idx = jnp.pad(idx, (0, B_pad - B))      # padded rows use class 0

    b2 = bias.reshape(1, E_pad)
    w_itemsize = jnp.dtype(w_t.dtype).itemsize
    out_block_bytes = tb * E_pad * jnp.dtype(out_dtype).itemsize
    table_bytes = C * E_pad * w_itemsize

    if table_bytes <= table_vmem_budget:
        # ----- Path A: resident table + one-hot MXU matmul per batch tile ---
        need = (table_bytes + E_pad * w_itemsize
                + 2 * out_block_bytes + 2 * tb * 4)
        out = pl.pallas_call(
            _resident_table_kernel,
            out_shape=jax.ShapeDtypeStruct((B_pad, E_pad), out_dtype),
            grid=(n_blocks,),
            in_specs=[
                pl.BlockSpec((tb, 1), lambda i: (i, 0)),       # indices
                pl.BlockSpec((C, E_pad), lambda i: (0, 0)),    # table (resident)
                pl.BlockSpec((1, E_pad), lambda i: (0, 0)),    # bias (resident)
            ],
            out_specs=pl.BlockSpec((tb, E_pad), lambda i: (i, 0)),
            compiler_params=pltpu.CompilerParams(
                dimension_semantics=("parallel",),
                vmem_limit_bytes=_vmem_limit(need)),
        )(idx.reshape(B_pad, 1), w_t, b2)
    else:
        # ----- Path B: per-row DMA gather into a resident (TB, E) out tile --
        # (1, 1, E) blocks on a (C, 1, E) view satisfy the (8,128) rule for
        # any C; only the B selected rows are fetched from HBM.
        w3 = w_t.reshape(C, 1, E_pad)
        need = 4 * E_pad * w_itemsize + E_pad * w_itemsize + 2 * out_block_bytes
        grid_spec = pltpu.PrefetchScalarGridSpec(
            num_scalar_prefetch=1,
            grid=(n_blocks, tb),
            in_specs=[
                # Data-dependent row gather; 3-deep buffering hides the
                # latency-bound per-row fetch.
                pl.BlockSpec((1, 1, E_pad),
                             lambda i, r, idx_ref: (idx_ref[i * tb + r], 0, 0),
                             pipeline_mode=pl.Buffered(3)),
                pl.BlockSpec((1, E_pad), lambda i, r, idx_ref: (0, 0)),
            ],
            out_specs=pl.BlockSpec((tb, E_pad),
                                   lambda i, r, idx_ref: (i, 0)),
        )
        out = pl.pallas_call(
            _gather_rows_kernel,
            out_shape=jax.ShapeDtypeStruct((B_pad, E_pad), out_dtype),
            grid_spec=grid_spec,
            compiler_params=pltpu.CompilerParams(
                dimension_semantics=("parallel", "arbitrary"),
                vmem_limit_bytes=_vmem_limit(need)),
        )(idx, w3, b2)

    return out[:B, :E]


if __name__ == "__main__":
    key = jax.random.PRNGKey(0)

    def init_linear(k, num_classes, embedding_size):
        # nn.Linear default init: U(-1/sqrt(fan_in), 1/sqrt(fan_in)).
        k_w, k_b = jax.random.split(k)
        bound = 1.0 / (num_classes ** 0.5)
        W = jax.random.uniform(k_w, (embedding_size, num_classes),
                               jnp.float32, minval=-bound, maxval=bound)
        b = jax.random.uniform(k_b, (embedding_size,),
                               jnp.float32, minval=-bound, maxval=bound)
        return W, b

    def reference(class_idx, W, b, dtype):
        one_hot = jax.nn.one_hot(class_idx, W.shape[1], dtype=dtype)
        return one_hot @ W.T.astype(dtype) + b.astype(dtype)

    k1, k2, k3, k4 = jax.random.split(key, 4)

    # Config 1: resident-table path (A), single batch tile.
    C1, E1, B1 = 16, 256, 8
    W1, b1 = init_linear(k1, C1, E1)
    idx1 = jax.random.randint(k2, (B1,), 0, C1, jnp.int32)
    out1 = jax.block_until_ready(
        class_embedding(idx1, W1.T, b1, dtype=jnp.float32))
    ref1 = reference(idx1, W1, b1, jnp.float32)
    assert out1.shape == (B1, E1), out1.shape
    assert jnp.allclose(out1, ref1, atol=1e-5, rtol=1e-5), \
        float(jnp.max(jnp.abs(out1 - ref1)))

    # Config 2: non-multiple-of-128 embedding size + multiple batch blocks
    # (exercises E padding and >=2 parallel grid blocks for v7x).
    C2, E2, B2 = 16, 192, 40
    W2, b2 = init_linear(k3, C2, E2)
    idx2 = jax.random.randint(k4, (B2,), 0, C2, jnp.int32)
    out2 = jax.block_until_ready(
        class_embedding(idx2, W2.T, b2, dtype=jnp.float32))
    ref2 = reference(idx2, W2, b2, jnp.float32)
    assert out2.shape == (B2, E2), out2.shape
    assert jnp.allclose(out2, ref2, atol=1e-5, rtol=1e-5), \
        float(jnp.max(jnp.abs(out2 - ref2)))

    # Config 3: force the large-table per-row-gather path (B) on the same
    # small problem so both code paths are run-checked.
    out3 = jax.block_until_ready(
        class_embedding(idx2, W2.T, b2, dtype=jnp.float32,
                        table_vmem_budget=0))
    assert jnp.allclose(out3, ref2, atol=1e-5, rtol=1e-5), \
        float(jnp.max(jnp.abs(out3 - ref2)))

    print("KERNEL_OK")
</pallas_src>

<mosaic_0001>
module attributes {stable_mosaic.version = 11 : i64} {
  func.func @_resident_table_kernel(%arg0: i32, %arg1: memref<16x1xi32, #tpu.memory_space<vmem>>, %arg2: memref<16x256xf32, #tpu.memory_space<vmem>>, %arg3: memref<1x256xf32, #tpu.memory_space<vmem>>, %arg4: memref<16x256xf32, #tpu.memory_space<vmem>>) attributes {dimension_semantics = [#tpu.dimension_semantics<parallel>], iteration_bounds = array<i64: 1>, scalar_prefetch = 0 : i64, scratch_operands = 0 : i64, tpu.core_type = #tpu.core_type<tc>, window_params = [{transform_indices = @transform_0, window_bounds = array<i64: 16, 1>}, {pipeline_mode = #tpu.pipeline_mode<synchronous>, transform_indices = @transform_1, window_bounds = array<i64: 16, 256>}, {pipeline_mode = #tpu.pipeline_mode<synchronous>, transform_indices = @transform_2, window_bounds = array<i64: 1, 256>}, {transform_indices = @transform_3, window_bounds = array<i64: 16, 256>}]} {
    %c0 = arith.constant 0 : index
    %c0_0 = arith.constant 0 : index
    %0 = vector.load %arg1[%c0, %c0_0] : memref<16x1xi32, #tpu.memory_space<vmem>>, vector<16x1xi32>
    %1 = tpu.iota {dimensions = array<i32: 1>} : vector<16x16xi32>
    %2 = vector.broadcast %0 : vector<16x1xi32> to vector<16x16xi32>
    %3 = arith.cmpi eq, %1, %2 : vector<16x16xi32>
    %4 = arith.extui %3 : vector<16x16xi1> to vector<16x16xi32>
    %5 = arith.sitofp %4 : vector<16x16xi32> to vector<16x16xf32>
    %c0_1 = arith.constant 0 : index
    %c0_2 = arith.constant 0 : index
    %6 = vector.load %arg2[%c0_1, %c0_2] : memref<16x256xf32, #tpu.memory_space<vmem>>, vector<16x256xf32>
    %cst = arith.constant dense<0.000000e+00> : vector<16x256xf32>
    %7 = tpu.matmul %5, %6, %cst {dimension_numbers = #tpu.dot_dimension_numbers<[1], [0], [0], [1], [0, 0, 1, 1], [], []>} : vector<16x16xf32>, vector<16x256xf32>, vector<16x256xf32> -> vector<16x256xf32>
    %c0_3 = arith.constant 0 : index
    %c0_4 = arith.constant 0 : index
    %8 = vector.load %arg3[%c0_3, %c0_4] : memref<1x256xf32, #tpu.memory_space<vmem>>, vector<1x256xf32>
    %9 = vector.broadcast %8 : vector<1x256xf32> to vector<16x256xf32>
    %10 = arith.addf %7, %9 : vector<16x256xf32>
    %c0_5 = arith.constant 0 : index
    %c0_6 = arith.constant 0 : index
    %11 = vector.load %arg4[%c0_5, %c0_6] : memref<16x256xf32, #tpu.memory_space<vmem>>, vector<16x256xf32>
    tpu.vector_store %arg4[%c0_5, %c0_6], %10 {strides = array<i32>} : memref<16x256xf32, #tpu.memory_space<vmem>>, vector<16x256xf32>,
    return
  }
  func.func @transform_0(%arg0: i32) -> (i32, i32) {
    %c0_i32 = arith.constant 0 : i32
    %c0_i32_0 = arith.constant 0 : i32
    return %arg0, %c0_i32 : i32, i32
  }
  func.func @transform_1(%arg0: i32) -> (i32, i32) {
    %c0_i32 = arith.constant 0 : i32
    %c0_i32_0 = arith.constant 0 : i32
    %c0_i32_1 = arith.constant 0 : i32
    return %c0_i32, %c0_i32_0 : i32, i32
  }
  func.func @transform_2(%arg0: i32) -> (i32, i32) {
    %c0_i32 = arith.constant 0 : i32
    %c0_i32_0 = arith.constant 0 : i32
    %c0_i32_1 = arith.constant 0 : i32
    return %c0_i32, %c0_i32_0 : i32, i32
  }
  func.func @transform_3(%arg0: i32) -> (i32, i32) {
    %c0_i32 = arith.constant 0 : i32
    %c0_i32_0 = arith.constant 0 : i32
    return %arg0, %c0_i32 : i32, i32
  }
}

</mosaic_0001>

<bundles_post_ra>
// kernel: tpu_custom_call.1
= control target key start
LH: loop header
LB: loop body
LE: loop exit
PB: predicated region body
PF: predicated region fallthrough
CT: control target
= control target key end

     0   :  { %8 = vsyncpa [#allocation3], 0  ;;  %s249_s0 = inlined_call_operand.vmem [shape: s32[16,1], index: 0, kind: input, shape index: {}]   ;;  %s250_s1 = inlined_call_operand.hbm [shape: f32[16,256], index: 1, kind: input, shape index: {}]   ;;  %s251_s2 = inlined_call_operand.vmem [shape: f32[1,256], index: 2, kind: input, shape index: {}]   ;;  %s252_s3 = inlined_call_operand.hbm [shape: f32[16,256], index: 3, kind: output, shape index: {}]  }
   0x1   :  { %9 = vsyncpa [#allocation4], 0  ;;  %s16_s14 = sshll.u32 %s250_s1, 4  ;;  %s202_s15 = smov [#allocation2]   ;;  %s17_s14 = int_to_ptr.hbm [resolvable:$true] %s16_s14 }
   0x2   :  { %s18_s16 = sshll.u32 %s202_s15, 4  ;;  %s203_s17 = smov 256   ;;  %s19_s16 = int_to_ptr.vmem [resolvable:$true] %s18_s16 }
   0x3   :  { %s204_s18 = smov 16  }
   0x4   :  { %24 = dma.hbm_to_vmem [thread:$0]  %s17_s14, 512, %s19_s16, [#allocation3], %s203_s17, %s203_s17, %s204_s18  }
   0x5   :  { %198 = dma.done.wait [#allocation3], 512  }
   0x6   :  { %199 = vsyncadd [#allocation3], 4294966784  ;;  %v205_v0 = vmov 0   ;;  %v32_v1 = vld [vmem:[%s249_s0 + $0x8] sm:$0xff]  ;;  %v49_v2 = vld [vmem:[#allocation2 + $0x10] sm:$0xff]  ;;  %v33_v7 = vlaneseq  ;;  %vm57_vm0 = vcmask 130048  }
   0x7   :  { %149 = vset.pattern.permute.xlu0 %v205_v0  ;;  %139 = vmatpush.msra.mxu2 %v49_v2  ;;  %v50_v3 = vld [vmem:[#allocation2 + $0x18] sm:$0xff]  ;;  %v31_v4 = vld [vmem:[%s249_s0] sm:$0xff]  ;;  %v48_v6 = vld [vmem:[#allocation2 + $0x8] sm:$0xff]  ;;  %v206_v10 = vmov 0.0   ;;  %s207_s23 = smov [#allocation5]   ;;  %s120_s27 = sshll.u32 %s252_s3, 4  ;;  %s121_s27 = int_to_ptr.hbm [resolvable:$true] %s120_s27 }
   0x8   :  { %39 = vperm.xlu0 %149, %v32_v1   ;;  %141 = vmatpush.msra.mxu3 %v50_v3  ;;  %v47_v5 = vld [vmem:[#allocation2] sm:$0xff]  ;;  %v34_v8 = vand.u32 127, %v33_v7  ;;  %s118_s24 = sshll.u32 %s207_s23, 4  ;;  %s119_s24 = int_to_ptr.vmem [resolvable:$true] %s118_s24 }
   0x9   :  { %78 = vmatpush.msra.mxu0 %v49_v2  ;;  %101 = vmatpush.msra.mxu1 %v50_v3  ;;  %v51_v14 = vld [vmem:[%s251_s2] sm:$0x3] }
   0xa   :  { %140 = vmatpush.msra.mxu2 %v47_v5  ;;  %142 = vmatpush.msra.mxu3 %v48_v6  ;;  %v53_v15 = vperm.slane %v51_v14, 0  ;;  %v54_v16 = vperm.slane %v51_v14, 1 }
   0xb   :  { %79 = vmatpush.msra.mxu0 %v47_v5  ;;  %102 = vmatpush.msra.mxu1 %v48_v6 }
  0x10   :  { %36 = vperm.xlu0 %149, %v31_v4  }
  0x7a   :  { %v40_v9 = vpop.permute.xlu0 %39 }
  0x7b   :  { %vm42_vm1 = vcmp.eq.s32.totalorder %v34_v8, %v40_v9 }
  0x7c   :  { %v134_v11 = vsel %vm42_vm1, 1.0, %v206_v10 }
  0x7d   :  { %136 = vmatmul.msk.f32.vlgmr.msra.gmra.mxu2 %vm57_vm0, %v134_v11  ;;  %138 = vmatmul.msk.f32.vlgmr.msra.gmra.mxu3 %vm57_vm0, %v134_v11 }
  0x82   :  { %v37_v12 = vpop.permute.xlu0 %36 }
  0x83   :  { %vm41_vm2 = vcmp.eq.s32.totalorder %v34_v8, %v37_v12 }
  0x84   :  { %v133_v13 = vsel %vm41_vm2, 1.0, %v206_v10 }
  0x85   :  { %135 = vmatmul.msk.f32.vlgmr.msra.gmra.mxu0 %vm57_vm0, %v133_v13  ;;  %137 = vmatmul.msk.f32.vlgmr.msra.gmra.mxu1 %vm57_vm0, %v133_v13 }
 0x100   :  { %v84_v17 = vpop.f32.mrf.mxu2  ;;  %v107_v18 = vpop.f32.mrf.mxu3 }
 0x101   :  { %v85_v19 = vadd.f32 %v84_v17, %v53_v15  ;;  %v108_v20 = vadd.f32 %v107_v18, %v54_v16 }
 0x102   :  { %v81_v21 = vpop.f32.mrf.mxu0  ;;  %v104_v22 = vpop.f32.mrf.mxu1 }
 0x103   :  { %112 = vst [vmem:[#allocation5 + $0x10] sm:$0xff] %v85_v19  ;;  %v82_v23 = vadd.f32 %v81_v21, %v53_v15  ;;  %v105_v24 = vadd.f32 %v104_v22, %v54_v16 }
 0x104   :  { %113 = vst [vmem:[#allocation5 + $0x18] sm:$0xff] %v108_v20 }
 0x105   :  { %110 = vst [vmem:[#allocation5] sm:$0xff] %v82_v23 }
 0x106   :  { %111 = vst [vmem:[#allocation5 + $0x8] sm:$0xff] %v105_v24 }
 0x107   :  { %126 = dma.vmem_to_hbm [thread:$0]  %s119_s24, 512, %s121_s27, [#allocation4], %s203_s17, %s203_s17, %s204_s18  }
 0x108   :  { %200 = dma.done.wait [#allocation4], 512  }
 0x109   :  { %201 = vsyncadd [#allocation4], 4294966784 }
 0x10a   :  { %131 = vsyncpa [#allocation3], 1 }
 0x10b   :  { %132 = vsyncpa [#allocation4], 1 }

</bundles_post_ra>
